<compile_context>
chip_gen: v6e
topology: v6e:2x2x1
jax: 0.10.0
libtpu: 0.0.40
codegen_flags: <defaults>
</compile_context>

<pallas_src>
import functools

import jax
import jax.numpy as jnp
from jax.experimental import pallas as pl
from jax.experimental.pallas import tpu as pltpu


def _round_up(n: int, m: int) -> int:
    return ((n + m - 1) // m) * m


def _choose_tm(B: int, tm: int) -> int:
    """Batch tile: multiple of 8 sublanes, <= round_up(B, 8), >= 2 blocks if possible."""
    tm = max(8, (int(tm) // 8) * 8)
    tm = min(tm, _round_up(B, 8))
    # v7x megacore: give the "parallel" batch axis at least 2 blocks to shard
    # across the 2 TensorCores whenever the batch is big enough.
    if B >= 16 and pl.cdiv(B, tm) < 2:
        tm = _round_up(pl.cdiv(B, 2), 8)
    return tm


def make_mlp_kernel(in_scale: float, out_scale: float, hidden_w: int):
    inv_in = 1.0 / float(in_scale)
    inv_out = 1.0 / float(out_scale)

    def mlp_kernel(x_ref, w1t_ref, w2row_ref, h1_ref, h2_ref):
        # fc1: (TM, D) @ (D, Wp) -> (TM, Wp) on the MXU, f32 accumulate,
        # scaled by 1/in_scale. Padded columns of w1t are zero, so padded
        # lanes of h1p are exactly zero.
        h1p = jnp.dot(x_ref[...], w1t_ref[...],
                      preferred_element_type=jnp.float32) * inv_in

        # Store only the real hidden width (un-padded writeback).
        h1_ref[...] = h1p[:, :hidden_w]

        # relu flag is False -> h1act = h1 (identity)

        # fc2: elementwise multiply with w2's row + lane reduction instead of
        # a >99%-padded (Wp x 1) MXU matmul. Padded lanes contribute 0 * 0.
        h2_ref[...] = jnp.sum(h1p * w2row_ref[...], axis=-1,
                              keepdims=True) * inv_out

    return mlp_kernel


def mlp_forward(x, w1, w2, *, in_scale, out_scale, tm=1024):
    """x: (B, 784) f32; w1: (w, 784) f32 (PyTorch layout); w2: (1, w) f32.

    Returns (h2 (B, 1), h1 (B, w), z (w,)) matching the PyTorch forward.
    Call under jax.jit so the (tiny) weight transpose/pad prep is compiled
    into the same program instead of separate per-call launches.
    """
    B, D = x.shape
    W = w1.shape[0]

    # Lane-dense hidden width for the MXU matmul N dimension.
    Wp = _round_up(W, 128)

    tm = _choose_tm(B, tm)
    grid = (pl.cdiv(B, tm),)

    # Weights: w1 transposed to (D, W), zero-padded to (D, Wp); w2 row padded
    # to (1, Wp). Both stay VMEM-resident (constant index_map, single buffer).
    w1t_p = jnp.pad(w1.T, ((0, 0), (0, Wp - W)))
    w2row_p = jnp.pad(w2, ((0, 0), (0, Wp - W)))

    # VMEM budget: double-buffered x / h1 / h2 tiles + single-buffered weights.
    vmem_need = 4 * (2 * tm * D + 2 * tm * W + 2 * tm + D * Wp + Wp)
    vmem_limit = min(max(2 * vmem_need, 16 << 20), 48 << 20)

    kernel = make_mlp_kernel(in_scale, out_scale, W)

    h1, h2 = pl.pallas_call(
        kernel,
        out_shape=(
            jax.ShapeDtypeStruct((B, W), jnp.float32),
            jax.ShapeDtypeStruct((B, 1), jnp.float32),
        ),
        grid=grid,
        in_specs=[
            pl.BlockSpec((tm, D), lambda i: (i, 0)),          # x tile, double-buffered
            pl.BlockSpec((D, Wp), lambda i: (0, 0),
                         pipeline_mode=pl.Buffered(1)),       # w1t resident
            pl.BlockSpec((1, Wp), lambda i: (0, 0),
                         pipeline_mode=pl.Buffered(1)),       # w2 row resident
        ],
        out_specs=(
            pl.BlockSpec((tm, W), lambda i: (i, 0)),          # h1 tile (un-padded)
            pl.BlockSpec((tm, 1), lambda i: (i, 0)),          # h2 tile
        ),
        compiler_params=pltpu.CompilerParams(
            dimension_semantics=("parallel",),
            vmem_limit_bytes=int(vmem_limit),
        ),
    )(x, w1t_p, w2row_p)

    # z = sum(W2.T, dim=1) with W2 of shape (1, w) is just W2's row.
    z = w2.reshape(W)
    return h2, h1, z


if __name__ == "__main__":
    # Module config: param='ntk', gam=1.0, hidden width w=32, L unused.
    width = 32
    gam = 1.0
    in_scale = 784 ** 0.5
    out_scale = width ** 0.5 * gam

    B = 8
    key = jax.random.PRNGKey(0)
    kx, k1, k2 = jax.random.split(key, 3)

    # Deterministic synthetic parameters (PyTorch Linear weight shapes).
    x = jax.random.normal(kx, (B, 784), dtype=jnp.float32)
    w1 = jax.random.normal(k1, (width, 784), dtype=jnp.float32) * (1.0 / 784 ** 0.5)
    w2 = jax.random.normal(k2, (1, width), dtype=jnp.float32) * (1.0 / width ** 0.5)

    fwd = jax.jit(functools.partial(mlp_forward,
                                    in_scale=in_scale, out_scale=out_scale))
    h2, h1, z = fwd(x, w1, w2)
    jax.block_until_ready((h2, h1, z))

    # Reference check in plain JAX.
    h1_ref = (x @ w1.T) / in_scale
    h2_ref = (h1_ref @ w2.T) / out_scale
    z_ref = jnp.sum(w2.T, axis=1)
    assert h2.shape == (B, 1) and h1.shape == (B, width) and z.shape == (width,)
    assert jnp.allclose(h1, h1_ref, atol=1e-5, rtol=1e-5)
    assert jnp.allclose(h2, h2_ref, atol=1e-5, rtol=1e-5)
    assert jnp.allclose(z, z_ref, atol=1e-6, rtol=1e-6)

    print("KERNEL_OK")
</pallas_src>

<mosaic_0001>
module attributes {stable_mosaic.version = 11 : i64} {
  func.func @mlp_kernel(%arg0: i32, %arg1: memref<8x784xf32, #tpu.memory_space<vmem>>, %arg2: memref<784x128xf32, #tpu.memory_space<vmem>>, %arg3: memref<1x128xf32, #tpu.memory_space<vmem>>, %arg4: memref<8x32xf32, #tpu.memory_space<vmem>>, %arg5: memref<8x1xf32, #tpu.memory_space<vmem>>) attributes {dimension_semantics = [#tpu.dimension_semantics<parallel>], iteration_bounds = array<i64: 1>, scalar_prefetch = 0 : i64, scratch_operands = 0 : i64, tpu.core_type = #tpu.core_type<tc>, window_params = [{transform_indices = @transform_0, window_bounds = array<i64: 8, 784>}, {pipeline_mode = #tpu.pipeline_mode<synchronous>, transform_indices = @transform_1, window_bounds = array<i64: 784, 128>}, {pipeline_mode = #tpu.pipeline_mode<synchronous>, transform_indices = @transform_2, window_bounds = array<i64: 1, 128>}, {transform_indices = @transform_3, window_bounds = array<i64: 8, 32>}, {transform_indices = @transform_4, window_bounds = array<i64: 8, 1>}]} {
    %c0 = arith.constant 0 : index
    %c0_0 = arith.constant 0 : index
    %0 = vector.load %arg1[%c0, %c0_0] : memref<8x784xf32, #tpu.memory_space<vmem>>, vector<8x784xf32>
    %c0_1 = arith.constant 0 : index
    %c0_2 = arith.constant 0 : index
    %1 = vector.load %arg2[%c0_1, %c0_2] : memref<784x128xf32, #tpu.memory_space<vmem>>, vector<784x128xf32>
    %cst = arith.constant dense<0.000000e+00> : vector<8x128xf32>
    %2 = tpu.matmul %0, %1, %cst {dimension_numbers = #tpu.dot_dimension_numbers<[1], [0], [0], [1], [0, 0, 1, 1], [], []>} : vector<8x784xf32>, vector<784x128xf32>, vector<8x128xf32> -> vector<8x128xf32>
    %cst_3 = arith.constant 0.0357142873 : f32
    %3 = vector.broadcast %cst_3 : f32 to vector<8x128xf32>
    %4 = arith.mulf %2, %3 : vector<8x128xf32>
    %5 = vector.extract_strided_slice %4 {offsets = [0, 0], sizes = [8, 32], strides = [1, 1]} : vector<8x128xf32> to vector<8x32xf32>
    %c0_4 = arith.constant 0 : index
    %c0_5 = arith.constant 0 : index
    %6 = vector.load %arg4[%c0_4, %c0_5] : memref<8x32xf32, #tpu.memory_space<vmem>>, vector<8x32xf32>
    tpu.vector_store %arg4[%c0_4, %c0_5], %5 {strides = array<i32>} : memref<8x32xf32, #tpu.memory_space<vmem>>, vector<8x32xf32>,
    %c0_6 = arith.constant 0 : index
    %c0_7 = arith.constant 0 : index
    %7 = vector.load %arg3[%c0_6, %c0_7] : memref<1x128xf32, #tpu.memory_space<vmem>>, vector<1x128xf32>
    %8 = vector.broadcast %7 : vector<1x128xf32> to vector<8x128xf32>
    %9 = arith.mulf %4, %8 : vector<8x128xf32>
    %cst_8 = arith.constant dense<0.000000e+00> : vector<8xf32>
    %10 = vector.multi_reduction <add>, %9, %cst_8 [1] : vector<8x128xf32> to vector<8xf32>
    %11 = vector.shape_cast %10 : vector<8xf32> to vector<8x1xf32>
    %cst_9 = arith.constant 0.176776692 : f32
    %12 = vector.broadcast %cst_9 : f32 to vector<8x1xf32>
    %13 = arith.mulf %11, %12 : vector<8x1xf32>
    %c0_10 = arith.constant 0 : index
    %c0_11 = arith.constant 0 : index
    %14 = vector.load %arg5[%c0_10, %c0_11] : memref<8x1xf32, #tpu.memory_space<vmem>>, vector<8x1xf32>
    tpu.vector_store %arg5[%c0_10, %c0_11], %13 {strides = array<i32>} : memref<8x1xf32, #tpu.memory_space<vmem>>, vector<8x1xf32>,
    return
  }
  func.func @transform_0(%arg0: i32) -> (i32, i32) {
    %c0_i32 = arith.constant 0 : i32
    %c0_i32_0 = arith.constant 0 : i32
    return %arg0, %c0_i32 : i32, i32
  }
  func.func @transform_1(%arg0: i32) -> (i32, i32) {
    %c0_i32 = arith.constant 0 : i32
    %c0_i32_0 = arith.constant 0 : i32
    %c0_i32_1 = arith.constant 0 : i32
    return %c0_i32, %c0_i32_0 : i32, i32
  }
  func.func @transform_2(%arg0: i32) -> (i32, i32) {
    %c0_i32 = arith.constant 0 : i32
    %c0_i32_0 = arith.constant 0 : i32
    %c0_i32_1 = arith.constant 0 : i32
    return %c0_i32, %c0_i32_0 : i32, i32
  }
  func.func @transform_3(%arg0: i32) -> (i32, i32) {
    %c0_i32 = arith.constant 0 : i32
    %c0_i32_0 = arith.constant 0 : i32
    return %arg0, %c0_i32 : i32, i32
  }
  func.func @transform_4(%arg0: i32) -> (i32, i32) {
    %c0_i32 = arith.constant 0 : i32
    %c0_i32_0 = arith.constant 0 : i32
    return %arg0, %c0_i32 : i32, i32
  }
}

</mosaic_0001>

<bundles_post_ra>
// kernel: mlp_forward.1
= control target key start
LH: loop header
LB: loop body
LE: loop exit
PB: predicated region body
PF: predicated region fallthrough
CT: control target
= control target key end

     0   :  { %s934_s0 = inlined_call_operand.vmem [shape: f32[8,784], index: 0, kind: input, shape index: {}]   ;;  %s935_s1 = inlined_call_operand.vmem [shape: f32[784,128], index: 1, kind: input, shape index: {}]   ;;  %s936_s2 = inlined_call_operand.vmem [shape: f32[1,128], index: 2, kind: input, shape index: {}]   ;;  %s937_s3 = inlined_call_operand.hbm [shape: f32[8,32], index: 3, kind: output, shape index: {0}]   ;;  %s938_s4 = inlined_call_operand.vmem [shape: f32[8,1], index: 4, kind: output, shape index: {1}]  }
   0x1   :  { %v55_v0 = vld [vmem:[%s935_s1 + $0xf8] sm:$0xff]  ;;  %v54_v4 = vld [vmem:[%s935_s1 + $0xf0] sm:$0xff]  ;;  %v53_v8 = vld [vmem:[%s935_s1 + $0xe8] sm:$0xff] }
   0x2   :  { %v87_v1 = vld [vmem:[%s935_s1 + $0x1f8] sm:$0xff]  ;;  %442 = vmatprep.subr.mxu0 %v55_v0  ;;  %v86_v5 = vld [vmem:[%s935_s1 + $0x1f0] sm:$0xff]  ;;  %v85_v9 = vld [vmem:[%s935_s1 + $0x1e8] sm:$0xff] }
   0x3   :  { %v39_v2 = vld [vmem:[%s935_s1 + $0x78] sm:$0xff]  ;;  %477 = vmatprep.subr.mxu1 %v87_v1  ;;  %v38_v6 = vld [vmem:[%s935_s1 + $0x70] sm:$0xff]  ;;  %v37_v10 = vld [vmem:[%s935_s1 + $0x68] sm:$0xff] }
   0x4   :  { %v71_v3 = vld [vmem:[%s935_s1 + $0x178] sm:$0xff]  ;;  %443 = vmatpush3.msra.mxu0 %v39_v2  ;;  %v70_v7 = vld [vmem:[%s935_s1 + $0x170] sm:$0xff]  ;;  %v69_v11 = vld [vmem:[%s935_s1 + $0x168] sm:$0xff] }
   0x5   :  { %478 = vmatpush3.msra.mxu1 %v71_v3  ;;  %444 = vmatprep.subr.mxu0 %v54_v4  ;;  %v52_v12 = vld [vmem:[%s935_s1 + $0xe0] sm:$0xff]  ;;  %v51_v16 = vld [vmem:[%s935_s1 + $0xd8] sm:$0xff]  ;;  %v50_v20 = vld [vmem:[%s935_s1 + $0xd0] sm:$0xff] }
   0x6   :  { %479 = vmatprep.subr.mxu1 %v86_v5  ;;  %445 = vmatpush3.msra.mxu0 %v38_v6  ;;  %v84_v13 = vld [vmem:[%s935_s1 + $0x1e0] sm:$0xff]  ;;  %v83_v17 = vld [vmem:[%s935_s1 + $0x1d8] sm:$0xff]  ;;  %v82_v21 = vld [vmem:[%s935_s1 + $0x1d0] sm:$0xff] }
   0x7   :  { %480 = vmatpush3.msra.mxu1 %v70_v7  ;;  %446 = vmatprep.subr.mxu0 %v53_v8  ;;  %v36_v14 = vld [vmem:[%s935_s1 + $0x60] sm:$0xff]  ;;  %v35_v18 = vld [vmem:[%s935_s1 + $0x58] sm:$0xff]  ;;  %v34_v22 = vld [vmem:[%s935_s1 + $0x50] sm:$0xff] }
   0x8   :  { %481 = vmatprep.subr.mxu1 %v85_v9  ;;  %v68_v15 = vld [vmem:[%s935_s1 + $0x160] sm:$0xff]  ;;  %447 = vmatpush3.msra.mxu0 %v37_v10  ;;  %v67_v19 = vld [vmem:[%s935_s1 + $0x158] sm:$0xff]  ;;  %v66_v23 = vld [vmem:[%s935_s1 + $0x150] sm:$0xff] }
   0x9   :  { %482 = vmatpush3.msra.mxu1 %v69_v11  ;;  %448 = vmatprep.subr.mxu0 %v52_v12  ;;  %v49_v24 = vld [vmem:[%s935_s1 + $0xc8] sm:$0xff]  ;;  %v48_v28 = vld [vmem:[%s935_s1 + $0xc0] sm:$0xff]  ;;  %v47_v32 = vld [vmem:[%s935_s1 + $0xb8] sm:$0xff] }
   0xa   :  { %483 = vmatprep.subr.mxu1 %v84_v13  ;;  %449 = vmatpush3.msra.mxu0 %v36_v14  ;;  %v81_v25 = vld [vmem:[%s935_s1 + $0x1c8] sm:$0xff]  ;;  %v80_v29 = vld [vmem:[%s935_s1 + $0x1c0] sm:$0xff]  ;;  %v79_v33 = vld [vmem:[%s935_s1 + $0x1b8] sm:$0xff] }
   0xb   :  { %484 = vmatpush3.msra.mxu1 %v68_v15  ;;  %450 = vmatprep.subr.mxu0 %v51_v16  ;;  %v33_v26 = vld [vmem:[%s935_s1 + $0x48] sm:$0xff]  ;;  %v32_v30 = vld [vmem:[%s935_s1 + $0x40] sm:$0xff]  ;;  %v31_v34 = vld [vmem:[%s935_s1 + $0x38] sm:$0xff] }
   0xc   :  { %485 = vmatprep.subr.mxu1 %v83_v17  ;;  %451 = vmatpush3.msra.mxu0 %v35_v18  ;;  %v65_v27 = vld [vmem:[%s935_s1 + $0x148] sm:$0xff]  ;;  %v64_v31 = vld [vmem:[%s935_s1 + $0x140] sm:$0xff]  ;;  %v63_v35 = vld [vmem:[%s935_s1 + $0x138] sm:$0xff] }
   0xd   :  { %486 = vmatpush3.msra.mxu1 %v67_v19  ;;  %452 = vmatprep.subr.mxu0 %v50_v20  ;;  %v46_v36 = vld [vmem:[%s935_s1 + $0xb0] sm:$0xff]  ;;  %v45_v40 = vld [vmem:[%s935_s1 + $0xa8] sm:$0xff]  ;;  %v44_v44 = vld [vmem:[%s935_s1 + $0xa0] sm:$0xff] }
   0xe   :  { %487 = vmatprep.subr.mxu1 %v82_v21  ;;  %453 = vmatpush3.msra.mxu0 %v34_v22  ;;  %v78_v37 = vld [vmem:[%s935_s1 + $0x1b0] sm:$0xff]  ;;  %v77_v41 = vld [vmem:[%s935_s1 + $0x1a8] sm:$0xff]  ;;  %v76_v45 = vld [vmem:[%s935_s1 + $0x1a0] sm:$0xff] }
   0xf   :  { %488 = vmatpush3.msra.mxu1 %v66_v23  ;;  %454 = vmatprep.subr.mxu0 %v49_v24  ;;  %v30_v38 = vld [vmem:[%s935_s1 + $0x30] sm:$0xff]  ;;  %v29_v42 = vld [vmem:[%s935_s1 + $0x28] sm:$0xff]  ;;  %v28_v46 = vld [vmem:[%s935_s1 + $0x20] sm:$0xff] }
  0x10   :  { %489 = vmatprep.subr.mxu1 %v81_v25  ;;  %455 = vmatpush3.msra.mxu0 %v33_v26  ;;  %v62_v39 = vld [vmem:[%s935_s1 + $0x130] sm:$0xff]  ;;  %v61_v43 = vld [vmem:[%s935_s1 + $0x128] sm:$0xff]  ;;  %v60_v47 = vld [vmem:[%s935_s1 + $0x120] sm:$0xff] }
  0x11   :  { %490 = vmatpush3.msra.mxu1 %v65_v27  ;;  %456 = vmatprep.subr.mxu0 %v48_v28  ;;  %v43_v48 = vld [vmem:[%s935_s1 + $0x98] sm:$0xff]  ;;  %v42_v52 = vld [vmem:[%s935_s1 + $0x90] sm:$0xff]  ;;  %v41_v56 = vld [vmem:[%s935_s1 + $0x88] sm:$0xff] }
  0x12   :  { %491 = vmatprep.subr.mxu1 %v80_v29  ;;  %457 = vmatpush3.msra.mxu0 %v32_v30  ;;  %v75_v49 = vld [vmem:[%s935_s1 + $0x198] sm:$0xff]  ;;  %v74_v53 = vld [vmem:[%s935_s1 + $0x190] sm:$0xff]  ;;  %v73_v57 = vld [vmem:[%s935_s1 + $0x188] sm:$0xff] }
  0x13   :  { %492 = vmatpush3.msra.mxu1 %v64_v31  ;;  %458 = vmatprep.subr.mxu0 %v47_v32  ;;  %v27_v50 = vld [vmem:[%s935_s1 + $0x18] sm:$0xff]  ;;  %v26_v54 = vld [vmem:[%s935_s1 + $0x10] sm:$0xff]  ;;  %v25_v58 = vld [vmem:[%s935_s1 + $0x8] sm:$0xff] }
  0x14   :  { %493 = vmatprep.subr.mxu1 %v79_v33  ;;  %459 = vmatpush3.msra.mxu0 %v31_v34  ;;  %v59_v51 = vld [vmem:[%s935_s1 + $0x118] sm:$0xff]  ;;  %v58_v55 = vld [vmem:[%s935_s1 + $0x110] sm:$0xff]  ;;  %v57_v59 = vld [vmem:[%s935_s1 + $0x108] sm:$0xff] }
  0x15   :  { %494 = vmatpush3.msra.mxu1 %v63_v35  ;;  %460 = vmatprep.subr.mxu0 %v46_v36  ;;  %v40_v60 = vld [vmem:[%s935_s1 + $0x80] sm:$0xff]  ;;  %v18_v63 = vld [vmem:[%s934_s0 + $0x8] sm:$0xff]  ;;  %v20_v1 = vld [vmem:[%s934_s0 + $0x18] sm:$0xff] }
  0x16   :  { %495 = vmatprep.subr.mxu1 %v78_v37  ;;  %461 = vmatpush3.msra.mxu0 %v30_v38  ;;  %v72_v61 = vld [vmem:[%s935_s1 + $0x180] sm:$0xff]  ;;  %v19_v3 = vld [vmem:[%s934_s0 + $0x10] sm:$0xff]  ;;  %v119_v4 = vld [vmem:[%s935_s1 + $0x2f8] sm:$0xff] }
  0x17   :  { %496 = vmatpush3.msra.mxu1 %v62_v39  ;;  %462 = vmatprep.subr.mxu0 %v45_v40  ;;  %v24_v62 = vld [vmem:[%s935_s1] sm:$0xff]  ;;  %v103_v5 = vld [vmem:[%s935_s1 + $0x278] sm:$0xff]  ;;  %v22_v6 = vld [vmem:[%s934_s0 + $0x28] sm:$0xff] }
  0x18   :  { %497 = vmatprep.subr.mxu1 %v77_v41  ;;  %463 = vmatpush3.msra.mxu0 %v29_v42  ;;  %v56_v0 = vld [vmem:[%s935_s1 + $0x100] sm:$0xff]  ;;  %v118_v7 = vld [vmem:[%s935_s1 + $0x2f0] sm:$0xff]  ;;  %v121_v8 = vld [vmem:[%s935_s1 + $0x308] sm:$0xff] }
  0x19   :  { %498 = vmatpush3.msra.mxu1 %v61_v43  ;;  %464 = vmatprep.subr.mxu0 %v44_v44  ;;  %v17_v2 = vld [vmem:[%s934_s0] sm:$0xff]  ;;  %v102_v9 = vld [vmem:[%s935_s1 + $0x270] sm:$0xff] }
  0x1a   :  { %499 = vmatprep.subr.mxu1 %v76_v45  ;;  %465 = vmatpush3.msra.mxu0 %v28_v46 }
  0x1b   :  { %500 = vmatpush3.msra.mxu1 %v60_v47  ;;  %466 = vmatprep.subr.mxu0 %v43_v48 }
  0x1c   :  { %501 = vmatprep.subr.mxu1 %v75_v49  ;;  %467 = vmatpush3.msra.mxu0 %v27_v50 }
  0x1d   :  { %502 = vmatpush3.msra.mxu1 %v59_v51  ;;  %468 = vmatprep.subr.mxu0 %v42_v52 }
  0x1e   :  { %503 = vmatprep.subr.mxu1 %v74_v53  ;;  %469 = vmatpush3.msra.mxu0 %v26_v54 }
  0x1f   :  { %504 = vmatpush3.msra.mxu1 %v58_v55  ;;  %470 = vmatprep.subr.mxu0 %v41_v56 }
  0x20   :  { %505 = vmatprep.subr.mxu1 %v73_v57  ;;  %471 = vmatpush3.msra.mxu0 %v25_v58 }
  0x21   :  { %506 = vmatpush3.msra.mxu1 %v57_v59  ;;  %472 = vmatprep.subr.mxu0 %v40_v60 }
  0x22   :  { %507 = vmatprep.subr.mxu1 %v72_v61  ;;  %473 = vmatpush3.msra.mxu0 %v24_v62 }
  0x23   :  { %190 = vmatprep.mubr.f32.mxu0 %v18_v63  ;;  %508 = vmatpush3.msra.mxu1 %v56_v0 }
  0x24   :  { %260 = vmatprep.mubr.f32.mxu1 %v20_v1  ;;  %191 = vmatmul.mubr.f32.vlgmr.msra.gmra.mxu0 %v17_v2 }
  0x25   :  { %261 = vmatmul.mubr.f32.vlgmr.msra.gmra.mxu1 %v19_v3  ;;  %512 = vmatprep.subr.mxu0 %v119_v4 }
  0x26   :  { %330 = vmatprep.mubr.f32.mxu0 %v22_v6 }
  0x27   :  { %10 = vsyncpa [#allocation3], 0  ;;  %513 = vmatpush3.msra.mxu0 %v103_v5  ;;  %v117_v10 = vld [vmem:[%s935_s1 + $0x2e8] sm:$0xff]  ;;  %v582_v11 = vmov 0.0   ;;  %v120_v12 = vld [vmem:[%s935_s1 + $0x300] sm:$0xff]  ;;  %vm122_vm0 = vcmask 130048  }
  0x28   :  { %550 = vmatprep.subr.mxu1 %v582_v11  ;;  %514 = vmatprep.subr.mxu0 %v118_v7  ;;  %v101_v13 = vld [vmem:[%s935_s1 + $0x268] sm:$0xff]  ;;  %v116_v14 = vld [vmem:[%s935_s1 + $0x2e0] sm:$0xff]  ;;  %v23_v15 = vld [vmem:[%s934_s0 + $0x30] sm:$0xff]  ;;  %vm583_vm1 = vmmov 0   ;;  %vm407_vm2 = vcmask 261120  }
  0x29   :  { %551 = vmatpush3.msra.mxu1 %v121_v8  ;;  %515 = vmatpush3.msra.mxu0 %v102_v9  ;;  %v100_v16 = vld [vmem:[%s935_s1 + $0x260] sm:$0xff]  ;;  %v115_v17 = vld [vmem:[%s935_s1 + $0x2d8] sm:$0xff]  ;;  %v114_v19 = vld [vmem:[%s935_s1 + $0x2d0] sm:$0xff] }
  0x2a   :  { %552 = vmatprep.subr.mxu1 %v582_v11  ;;  %516 = vmatprep.subr.mxu0 %v117_v10  ;;  %v99_v18 = vld [vmem:[%s935_s1 + $0x258] sm:$0xff]  ;;  %v98_v20 = vld [vmem:[%s935_s1 + $0x250] sm:$0xff]  ;;  %v113_v21 = vld [vmem:[%s935_s1 + $0x2c8] sm:$0xff] }
  0x2b   :  { %553 = vmatpush3.msra.mxu1 %v120_v12  ;;  %517 = vmatpush3.msra.mxu0 %v101_v13  ;;  %v97_v22 = vld [vmem:[%s935_s1 + $0x248] sm:$0xff]  ;;  %v112_v23 = vld [vmem:[%s935_s1 + $0x2c0] sm:$0xff]  ;;  %v111_v25 = vld [vmem:[%s935_s1 + $0x2b8] sm:$0xff] }
  0x2c   :  { %554 = vmatprep.mubr.msk.f32.mxu1 %vm583_vm1, %v582_v11  ;;  %518 = vmatprep.subr.mxu0 %v116_v14  ;;  %v96_v24 = vld [vmem:[%s935_s1 + $0x240] sm:$0xff]  ;;  %v95_v26 = vld [vmem:[%s935_s1 + $0x238] sm:$0xff]  ;;  %v110_v27 = vld [vmem:[%s935_s1 + $0x2b0] sm:$0xff] }
  0x2d   :  { %555 = vmatmul.mubr.msk.f32.vlgmr.msra.gmra.mxu1 %vm122_vm0, %v23_v15  ;;  %519 = vmatpush3.msra.mxu0 %v100_v16  ;;  %v94_v28 = vld [vmem:[%s935_s1 + $0x230] sm:$0xff]  ;;  %v109_v29 = vld [vmem:[%s935_s1 + $0x2a8] sm:$0xff]  ;;  %v108_v31 = vld [vmem:[%s935_s1 + $0x2a0] sm:$0xff] }
  0x2e   :  { %520 = vmatprep.subr.mxu0 %v115_v17  ;;  %v93_v30 = vld [vmem:[%s935_s1 + $0x228] sm:$0xff]  ;;  %v92_v32 = vld [vmem:[%s935_s1 + $0x220] sm:$0xff]  ;;  %v107_v33 = vld [vmem:[%s935_s1 + $0x298] sm:$0xff] }
  0x2f   :  { %521 = vmatpush3.msra.mxu0 %v99_v18  ;;  %v91_v34 = vld [vmem:[%s935_s1 + $0x218] sm:$0xff]  ;;  %v106_v35 = vld [vmem:[%s935_s1 + $0x290] sm:$0xff]  ;;  %v105_v37 = vld [vmem:[%s935_s1 + $0x288] sm:$0xff] }
  0x30   :  { %522 = vmatprep.subr.mxu0 %v114_v19  ;;  %v90_v36 = vld [vmem:[%s935_s1 + $0x210] sm:$0xff]  ;;  %v89_v38 = vld [vmem:[%s935_s1 + $0x208] sm:$0xff]  ;;  %v104_v39 = vld [vmem:[%s935_s1 + $0x280] sm:$0xff] }
  0x31   :  { %523 = vmatpush3.msra.mxu0 %v98_v20  ;;  %v88_v40 = vld [vmem:[%s935_s1 + $0x200] sm:$0xff] }
  0x32   :  { %524 = vmatprep.subr.mxu0 %v113_v21  ;;  %v21_v41 = vld [vmem:[%s934_s0 + $0x20] sm:$0xff]  ;;  %s584_s0 = smov [#allocation2]  }
  0x33   :  { %525 = vmatpush3.msra.mxu0 %v97_v22  ;;  %v441_v56 = vld [vmem:[%s936_s2] ss:$0 sm:$0xff]  ;;  %s428_s18 = sshll.u32 %s584_s0, 4  ;;  %s429_s18 = int_to_ptr.vmem [resolvable:$true] %s428_s18 }
  0x34   :  { %526 = vmatprep.subr.mxu0 %v112_v23  ;;  %s560_s19 = scalar_lea.vmem %s429_s18, 128  ;;  %p565_p1 = scmp.lt.s32.totalorder %s429_s18, %s429_s18 }
  0x35   :  { %527 = vmatpush3.msra.mxu0 %v96_v24  ;;  %p561_p0 = scmp.ne.s32.totalorder %s429_s18, %s560_s19  ;;  %p566_p2 = scmp.lt.s32.totalorder %s560_s19, %s560_s19 }
  0x36   :  { %528 = vmatprep.subr.mxu0 %v111_v25 }
  0x37   :  { %529 = vmatpush3.msra.mxu0 %v95_v26  ;;  %p567_p3 = por %p566_p2, %p565_p1 }
  0x38   :  { %530 = vmatprep.subr.mxu0 %v110_v27 }
  0x39   :  { %531 = vmatpush3.msra.mxu0 %v94_v28  ;;  %p568_p4 = pnand %p567_p3, %p561_p0 }
  0x3a   :  { %532 = vmatprep.subr.mxu0 %v109_v29 }
  0x3b   :  { %533 = vmatpush3.msra.mxu0 %v93_v30 }
  0x3c   :  { %534 = vmatprep.subr.mxu0 %v108_v31 }
  0x3d   :  { %535 = vmatpush3.msra.mxu0 %v92_v32 }
  0x3e   :  { %536 = vmatprep.subr.mxu0 %v107_v33 }
  0x3f   :  { %537 = vmatpush3.msra.mxu0 %v91_v34 }
  0x40   :  { %538 = vmatprep.subr.mxu0 %v106_v35 }
  0x41   :  { %539 = vmatpush3.msra.mxu0 %v90_v36 }
  0x42   :  { %540 = vmatprep.subr.mxu0 %v105_v37 }
  0x43   :  { %541 = vmatpush3.msra.mxu0 %v89_v38 }
  0x44   :  { %542 = vmatprep.subr.mxu0 %v104_v39 }
  0x45   :  { %543 = vmatpush3.msra.mxu0 %v88_v40 }
  0x46   :  { %331 = vmatmul.mubr.f32.vlgmr.msra.gmra.mxu0 %v21_v41 }
  0xe4   :  { %v474_v46 = vpop.f32.mrf.mxu0 }
  0xe5   :  { %v509_v42 = vpop.f32.mrf.mxu1 }
  0xe6   :  { %v475_v47 = vpop.f32.mrf.mxu0 }
  0xe7   :  { %v510_v43 = vpop.f32.mrf.mxu1  ;;  %v476_v48 = vadd.f32 %v475_v47, %v474_v46 }
  0xe8   :  { %v511_v49 = vadd.f32 %v510_v43, %v509_v42 }
  0xea   :  { %v263_v52 = vadd.f32 %v511_v49, %v476_v48 }
  0xed   :  { %v402_v44 = vpop.f32.mrf.mxu1 }
  0xef   :  { %v556_v45 = vpop.f32.mrf.mxu1 }
 0x106   :  { %v544_v50 = vpop.f32.mrf.mxu0 }
 0x108   :  { %v545_v51 = vpop.f32.mrf.mxu0 }
 0x109   :  { %v546_v53 = vadd.f32 %v545_v51, %v544_v50 }
 0x10b   :  { %v333_v54 = vadd.f32 %v546_v53, %v263_v52 }
 0x10d   :  { %v403_v55 = vadd.f32 %v402_v44, %v333_v54 }
 0x10f   :  { %v406_v57 = vmul.f32 0.035714287, %v403_v55 }
 0x111   :  { %v416_v58 = vmul.f32 %v441_v56, %v406_v57  ;;  %408 = vst.msk [vmem:[#allocation2] sm:$0xff] %vm407_vm2, %v406_v57 }
 0x113   :  { %417 = vadd.xlane.f32.xlu0 %v416_v58 }
 0x114   :  { %571 = shalt.err (!%p568_p4)
}
 0x115   :  { %431 = dma.vmem_to_hbm [thread:$0]  %s429_s18, 128, %s937_s3, [#allocation3]   ;;  %vm420_vm3 = vcmask 7168  }
 0x19c   :  { %v418_v59 = vpop.xlane.xlu0 %417 }
 0x19d   :  { %v419_v60 = vmul.f32 0.17677669, %v418_v59 }
 0x19f   :  { %421 = vst.msk [vmem:[%s938_s4] sm:$0xff] %vm420_vm3, %v419_v60 }
 0x1a0   :  { %580 = dma.done.wait [#allocation3], 128  }
 0x1a1   :  { %581 = vsyncadd [#allocation3], 4294967168 }
 0x1a2   :  { %439 = vsyncpa [#allocation3], 1 }

</bundles_post_ra>
